<compile_context>
chip_gen: v5e
topology: v5e:2x2
jax: 0.10.0
libtpu: 0.0.40
codegen_flags: <defaults>
</compile_context>

<pallas_src>
import functools

import jax
import jax.numpy as jnp
from jax.experimental import pallas as pl
from jax.experimental.pallas import tpu as pltpu


def _round_up(a, b):
    return ((a + b - 1) // b) * b


def _dice_ce_kernel(x_ref, t_ref, inter_out_ref, ce_out_ref,
                    inter_acc_ref, ce_acc_ref,
                    *, n_classes, tile_p, hw, needs_mask):
    p = pl.program_id(1)
    n_p = pl.num_programs(1)

    @pl.when(p == 0)
    def _():
        inter_acc_ref[...] = jnp.zeros_like(inter_acc_ref)
        ce_acc_ref[...] = jnp.zeros_like(ce_acc_ref)

    x = x_ref[0].astype(jnp.float32)    # (C, TP) logits
    t = t_ref[0]                        # (1, TP) int32 targets

    # target-class logit: one masked select + sublane sum
    cls = jax.lax.broadcasted_iota(jnp.int32, (n_classes, tile_p), 0)
    x_t = jnp.sum(jnp.where(cls == t, x, 0.0), axis=0, keepdims=True)  # (1, TP)

    # numerically-stable logsumexp over the class (sublane) axis
    m = jnp.max(x, axis=0, keepdims=True)                     # (1, TP)
    se = jnp.sum(jnp.exp(x - m), axis=0, keepdims=True)       # (1, TP)
    lse = m + jnp.log(se)                                     # (1, TP)

    ce_lane = lse - x_t            # per-pixel cross-entropy
    p_t = jnp.exp(-ce_lane)        # target-class softmax probability

    if needs_mask:                 # mask padded pixel lanes (static branch)
        lane = (jax.lax.broadcasted_iota(jnp.int32, (1, tile_p), 1)
                + p * tile_p)
        valid = (lane < hw).astype(jnp.float32)
        ce_lane = ce_lane * valid
        p_t = p_t * valid

    # lane-wide accumulation: no cross-lane reductions in the hot loop
    inter_acc_ref[...] += p_t
    ce_acc_ref[...] += ce_lane

    @pl.when(p == n_p - 1)
    def _():
        inter_n = jnp.sum(inter_acc_ref[...], axis=1, keepdims=True)  # (1, 1)
        ce_n = jnp.sum(ce_acc_ref[...], axis=1, keepdims=True)        # (1, 1)
        inter_out_ref[...] = jnp.broadcast_to(inter_n, (1, 1, 128))
        ce_out_ref[...] = jnp.broadcast_to(ce_n, (1, 1, 128))


def dice_ce_loss(logits_nchw, targets_nhw, *,
                 dice_weight=1.0, ce_weight=1.0, eps=1e-5):
    """DiceCELoss.forward with reduction='mean', weight=None."""
    N, C, H, W = logits_nchw.shape
    HW = H * W

    # Pixel tile: as large as possible while staying well inside VMEM on every
    # TPU generation (double-buffered inputs + f32 lane accumulators).
    itemsize = jnp.dtype(logits_nchw.dtype).itemsize
    vmem_budget = 16 * 1024 * 1024
    bytes_per_lane = 2 * (C * itemsize + 4) + 2 * 4
    tp_cap = max(128, min(8192, (vmem_budget // bytes_per_lane) // 128 * 128))
    TP = min(_round_up(HW, 128), tp_cap)
    HWp = _round_up(HW, TP)

    # Keep the logits in their original dtype through the HBM->VMEM DMA;
    # the kernel casts to f32 internally.
    x = logits_nchw.reshape(N, C, HW)
    t = targets_nhw.reshape(N, 1, HW).astype(jnp.int32)
    if HWp != HW:
        x = jnp.pad(x, ((0, 0), (0, 0), (0, HWp - HW)))
        t = jnp.pad(t, ((0, 0), (0, 0), (0, HWp - HW)))

    kernel = functools.partial(
        _dice_ce_kernel,
        n_classes=C, tile_p=TP, hw=HW, needs_mask=(HWp != HW))

    inter_out, ce_out = pl.pallas_call(
        kernel,
        out_shape=(jax.ShapeDtypeStruct((N, 1, 128), jnp.float32),
                   jax.ShapeDtypeStruct((N, 1, 128), jnp.float32)),
        grid_spec=pltpu.PrefetchScalarGridSpec(
            num_scalar_prefetch=0,
            grid=(N, HWp // TP),
            in_specs=[
                pl.BlockSpec((1, C, TP), lambda n, p: (n, 0, p)),
                pl.BlockSpec((1, 1, TP), lambda n, p: (n, 0, p)),
            ],
            out_specs=(
                pl.BlockSpec((1, 1, 128), lambda n, p: (n, 0, 0)),
                pl.BlockSpec((1, 1, 128), lambda n, p: (n, 0, 0)),
            ),
            scratch_shapes=[pltpu.VMEM((1, TP), jnp.float32),
                            pltpu.VMEM((1, TP), jnp.float32)],
        ),
        compiler_params=pltpu.CompilerParams(
            dimension_semantics=("parallel", "arbitrary"),
            vmem_limit_bytes=32 * 1024 * 1024),
    )(x, t)

    inter = inter_out[:, 0, 0]          # (N,) per-sample intersection
    ce_sum = ce_out[:, 0, 0]            # (N,) per-sample CE sum

    # dice denominator is analytically sum(probs) + sum(onehot) = 2*HW
    denom = jnp.float32(2.0 * HW)
    dice = jnp.mean(1.0 - (2.0 * inter + eps) / (denom + eps))
    ce = jnp.sum(ce_sum) / jnp.float32(N * HW)
    return dice_weight * dice + ce_weight * ce


def _reference(logits, targets, *, dice_weight=1.0, ce_weight=1.0, eps=1e-5):
    """Pure-JAX reference matching the PyTorch module semantics."""
    N, C, H, W = logits.shape
    probs = jax.nn.softmax(logits, axis=1)
    onehot = jnp.transpose(jax.nn.one_hot(targets, C, dtype=jnp.float32),
                           (0, 3, 1, 2))
    p_flat = probs.reshape(N, -1)
    t_flat = onehot.reshape(N, -1)
    inter = jnp.sum(p_flat * t_flat, axis=1)
    denom = jnp.sum(p_flat, axis=1) + jnp.sum(t_flat, axis=1)
    dice = jnp.mean(1.0 - (2.0 * inter + eps) / (denom + eps))
    logp = jax.nn.log_softmax(logits, axis=1)
    ce_px = -jnp.take_along_axis(logp, targets[:, None], axis=1)[:, 0]
    ce = jnp.mean(ce_px)
    return dice_weight * dice + ce_weight * ce


if __name__ == "__main__":
    N, C, H, W = 2, 4, 16, 16
    key = jax.random.PRNGKey(0)
    k1, k2 = jax.random.split(key)
    logits = jax.random.normal(k1, (N, C, H, W), dtype=jnp.float32)
    targets = jax.random.randint(k2, (N, H, W), 0, C, dtype=jnp.int32)

    loss = dice_ce_loss(logits, targets)
    loss = jax.block_until_ready(loss)

    ref = _reference(logits, targets)
    assert jnp.allclose(loss, ref, rtol=1e-5, atol=1e-5), (loss, ref)
    print("KERNEL_OK")
</pallas_src>

<mosaic_0001>
module attributes {stable_mosaic.version = 11 : i64} {
  func.func @_dice_ce_kernel(%arg0: i32, %arg1: i32, %arg2: memref<1x4x256xf32, #tpu.memory_space<vmem>>, %arg3: memref<1x1x256xi32, #tpu.memory_space<vmem>>, %arg4: memref<1x1x128xf32, #tpu.memory_space<vmem>>, %arg5: memref<1x1x128xf32, #tpu.memory_space<vmem>>, %arg6: memref<1x256xf32, #tpu.memory_space<vmem>>, %arg7: memref<1x256xf32, #tpu.memory_space<vmem>>) attributes {dimension_semantics = [#tpu.dimension_semantics<parallel>, #tpu.dimension_semantics<arbitrary>], iteration_bounds = array<i64: 2, 1>, scalar_prefetch = 0 : i64, scratch_operands = 2 : i64, tpu.core_type = #tpu.core_type<tc>, window_params = [{transform_indices = @transform_0, window_bounds = array<i64: 1, 4, 256>}, {transform_indices = @transform_1, window_bounds = array<i64: 1, 1, 256>}, {transform_indices = @transform_2, window_bounds = array<i64: 1, 1, 128>}, {transform_indices = @transform_3, window_bounds = array<i64: 1, 1, 128>}]} {
    %c0_i32 = arith.constant 0 : i32
    %0 = arith.cmpi eq, %arg1, %c0_i32 : i32
    %1 = arith.extui %0 : i1 to i32
    %c0_i32_0 = arith.constant 0 : i32
    %2 = arith.cmpi ne, %1, %c0_i32_0 : i32
    scf.if %2 {
      %cst_20 = arith.constant 0.000000e+00 : f32
      %36 = vector.broadcast %cst_20 : f32 to vector<1x256xf32>
      %c0_21 = arith.constant 0 : index
      %c0_22 = arith.constant 0 : index
      %37 = vector.load %arg6[%c0_21, %c0_22] : memref<1x256xf32, #tpu.memory_space<vmem>>, vector<1x256xf32>
      tpu.vector_store %arg6[%c0_21, %c0_22], %36 {strides = array<i32>} : memref<1x256xf32, #tpu.memory_space<vmem>>, vector<1x256xf32>,
      %cst_23 = arith.constant 0.000000e+00 : f32
      %38 = vector.broadcast %cst_23 : f32 to vector<1x256xf32>
      %c0_24 = arith.constant 0 : index
      %c0_25 = arith.constant 0 : index
      %39 = vector.load %arg7[%c0_24, %c0_25] : memref<1x256xf32, #tpu.memory_space<vmem>>, vector<1x256xf32>
      tpu.vector_store %arg7[%c0_24, %c0_25], %38 {strides = array<i32>} : memref<1x256xf32, #tpu.memory_space<vmem>>, vector<1x256xf32>,
    } else {
    }
    %c0 = arith.constant 0 : index
    %c0_1 = arith.constant 0 : index
    %c0_2 = arith.constant 0 : index
    %3 = vector.load %arg2[%c0, %c0_1, %c0_2] : memref<1x4x256xf32, #tpu.memory_space<vmem>>, vector<1x4x256xf32>
    %4 = vector.shape_cast %3 : vector<1x4x256xf32> to vector<4x256xf32>
    %c0_3 = arith.constant 0 : index
    %c0_4 = arith.constant 0 : index
    %c0_5 = arith.constant 0 : index
    %5 = vector.load %arg3[%c0_3, %c0_4, %c0_5] : memref<1x1x256xi32, #tpu.memory_space<vmem>>, vector<1x1x256xi32>
    %6 = vector.shape_cast %5 : vector<1x1x256xi32> to vector<1x256xi32>
    %7 = tpu.iota {dimensions = array<i32: 0>} : vector<4x256xi32>
    %8 = vector.broadcast %6 : vector<1x256xi32> to vector<4x256xi32>
    %9 = arith.cmpi eq, %7, %8 : vector<4x256xi32>
    %cst = arith.constant 0.000000e+00 : f32
    %10 = vector.broadcast %cst : f32 to vector<4x256xf32>
    %11 = arith.select %9, %4, %10 : vector<4x256xi1>, vector<4x256xf32>
    %cst_6 = arith.constant dense<0.000000e+00> : vector<256xf32>
    %12 = vector.multi_reduction <add>, %11, %cst_6 [0] : vector<4x256xf32> to vector<256xf32>
    %13 = vector.shape_cast %12 : vector<256xf32> to vector<1x256xf32>
    %cst_7 = arith.constant dense<0xFF800000> : vector<256xf32>
    %14 = vector.multi_reduction <maximumf>, %4, %cst_7 [0] : vector<4x256xf32> to vector<256xf32>
    %15 = vector.shape_cast %14 : vector<256xf32> to vector<1x256xf32>
    %16 = vector.broadcast %15 : vector<1x256xf32> to vector<4x256xf32>
    %17 = arith.subf %4, %16 : vector<4x256xf32>
    %18 = math.exp %17 : vector<4x256xf32>
    %cst_8 = arith.constant dense<0.000000e+00> : vector<256xf32>
    %19 = vector.multi_reduction <add>, %18, %cst_8 [0] : vector<4x256xf32> to vector<256xf32>
    %20 = vector.shape_cast %19 : vector<256xf32> to vector<1x256xf32>
    %21 = math.log %20 : vector<1x256xf32>
    %22 = arith.addf %15, %21 : vector<1x256xf32>
    %23 = arith.subf %22, %13 : vector<1x256xf32>
    %cst_9 = arith.constant 0.000000e+00 : f32
    %24 = vector.broadcast %cst_9 : f32 to vector<1x256xf32>
    %25 = arith.subf %24, %23 : vector<1x256xf32>
    %26 = math.exp %25 : vector<1x256xf32>
    %c0_10 = arith.constant 0 : index
    %c0_11 = arith.constant 0 : index
    %27 = vector.load %arg6[%c0_10, %c0_11] : memref<1x256xf32, #tpu.memory_space<vmem>>, vector<1x256xf32>
    %28 = arith.addf %27, %26 : vector<1x256xf32>
    %c0_12 = arith.constant 0 : index
    %c0_13 = arith.constant 0 : index
    %29 = vector.load %arg6[%c0_12, %c0_13] : memref<1x256xf32, #tpu.memory_space<vmem>>, vector<1x256xf32>
    tpu.vector_store %arg6[%c0_12, %c0_13], %28 {strides = array<i32>} : memref<1x256xf32, #tpu.memory_space<vmem>>, vector<1x256xf32>,
    %c0_14 = arith.constant 0 : index
    %c0_15 = arith.constant 0 : index
    %30 = vector.load %arg7[%c0_14, %c0_15] : memref<1x256xf32, #tpu.memory_space<vmem>>, vector<1x256xf32>
    %31 = arith.addf %30, %23 : vector<1x256xf32>
    %c0_16 = arith.constant 0 : index
    %c0_17 = arith.constant 0 : index
    %32 = vector.load %arg7[%c0_16, %c0_17] : memref<1x256xf32, #tpu.memory_space<vmem>>, vector<1x256xf32>
    tpu.vector_store %arg7[%c0_16, %c0_17], %31 {strides = array<i32>} : memref<1x256xf32, #tpu.memory_space<vmem>>, vector<1x256xf32>,
    %c0_i32_18 = arith.constant 0 : i32
    %33 = arith.cmpi eq, %arg1, %c0_i32_18 : i32
    %34 = arith.extui %33 : i1 to i32
    %c0_i32_19 = arith.constant 0 : i32
    %35 = arith.cmpi ne, %34, %c0_i32_19 : i32
    scf.if %35 {
      %c0_20 = arith.constant 0 : index
      %c0_21 = arith.constant 0 : index
      %36 = vector.load %arg6[%c0_20, %c0_21] : memref<1x256xf32, #tpu.memory_space<vmem>>, vector<1x256xf32>
      %cst_22 = arith.constant dense<0.000000e+00> : vector<1xf32>
      %37 = vector.multi_reduction <add>, %36, %cst_22 [1] : vector<1x256xf32> to vector<1xf32>
      %38 = vector.shape_cast %37 : vector<1xf32> to vector<1x1xf32>
      %c0_23 = arith.constant 0 : index
      %c0_24 = arith.constant 0 : index
      %39 = vector.load %arg7[%c0_23, %c0_24] : memref<1x256xf32, #tpu.memory_space<vmem>>, vector<1x256xf32>
      %cst_25 = arith.constant dense<0.000000e+00> : vector<1xf32>
      %40 = vector.multi_reduction <add>, %39, %cst_25 [1] : vector<1x256xf32> to vector<1xf32>
      %41 = vector.shape_cast %40 : vector<1xf32> to vector<1x1xf32>
      %42 = vector.shape_cast %38 : vector<1x1xf32> to vector<1x1x1xf32>
      %43 = vector.broadcast %42 : vector<1x1x1xf32> to vector<1x1x128xf32>
      %c0_26 = arith.constant 0 : index
      %c0_27 = arith.constant 0 : index
      %c0_28 = arith.constant 0 : index
      %44 = vector.load %arg4[%c0_26, %c0_27, %c0_28] : memref<1x1x128xf32, #tpu.memory_space<vmem>>, vector<1x1x128xf32>
      tpu.vector_store %arg4[%c0_26, %c0_27, %c0_28], %43 {strides = array<i32>} : memref<1x1x128xf32, #tpu.memory_space<vmem>>, vector<1x1x128xf32>,
      %45 = vector.shape_cast %41 : vector<1x1xf32> to vector<1x1x1xf32>
      %46 = vector.broadcast %45 : vector<1x1x1xf32> to vector<1x1x128xf32>
      %c0_29 = arith.constant 0 : index
      %c0_30 = arith.constant 0 : index
      %c0_31 = arith.constant 0 : index
      %47 = vector.load %arg5[%c0_29, %c0_30, %c0_31] : memref<1x1x128xf32, #tpu.memory_space<vmem>>, vector<1x1x128xf32>
      tpu.vector_store %arg5[%c0_29, %c0_30, %c0_31], %46 {strides = array<i32>} : memref<1x1x128xf32, #tpu.memory_space<vmem>>, vector<1x1x128xf32>,
    } else {
    }
    return
  }
  func.func @transform_0(%arg0: i32, %arg1: i32) -> (i32, i32, i32) {
    %c0_i32 = arith.constant 0 : i32
    %c0_i32_0 = arith.constant 0 : i32
    return %arg0, %c0_i32, %arg1 : i32, i32, i32
  }
  func.func @transform_1(%arg0: i32, %arg1: i32) -> (i32, i32, i32) {
    %c0_i32 = arith.constant 0 : i32
    %c0_i32_0 = arith.constant 0 : i32
    return %arg0, %c0_i32, %arg1 : i32, i32, i32
  }
  func.func @transform_2(%arg0: i32, %arg1: i32) -> (i32, i32, i32) {
    %c0_i32 = arith.constant 0 : i32
    %c0_i32_0 = arith.constant 0 : i32
    %c0_i32_1 = arith.constant 0 : i32
    return %arg0, %c0_i32, %c0_i32_0 : i32, i32, i32
  }
  func.func @transform_3(%arg0: i32, %arg1: i32) -> (i32, i32, i32) {
    %c0_i32 = arith.constant 0 : i32
    %c0_i32_0 = arith.constant 0 : i32
    %c0_i32_1 = arith.constant 0 : i32
    return %arg0, %c0_i32, %c0_i32_0 : i32, i32, i32
  }
}

</mosaic_0001>

<bundles_post_ra>
// kernel: tpu_custom_call.1
= control target key start
LH: loop header
LB: loop body
LE: loop exit
PB: predicated region body
PF: predicated region fallthrough
CT: control target
= control target key end

     0   :  { %9 = vsyncpa [#allocation5], 0  ;;  %s1051_s0 = inlined_call_operand.hbm [shape: f32[2,4,256], index: 0, kind: input, shape index: {}]   ;;  %s1052_s1 = inlined_call_operand.hbm [shape: s32[2,1,256], index: 1, kind: input, shape index: {}]   ;;  %s1053_s2 = inlined_call_operand.hbm [shape: f32[2,1,128], index: 2, kind: output, shape index: {0}]   ;;  %s1054_s3 = inlined_call_operand.hbm [shape: f32[2,1,128], index: 3, kind: output, shape index: {1}]  }
   0x1   :  { %11 = vsyncpa [#allocation5 + $0x1], 0 }
   0x2   :  { %12 = vsyncpa [#allocation8], 0 }
   0x3   :  { %14 = vsyncpa [#allocation8 + $0x1], 0 }
   0x4   :  { %15 = vsyncpa [#allocation6], 0 }
   0x5   :  { %17 = vsyncpa [#allocation6 + $0x1], 0 }
   0x6   :  { %18 = vsyncpa [#allocation11], 0 }
   0x7   :  { %20 = vsyncpa [#allocation11 + $0x1], 0  ;;  %s868_s12 = smov 0   ;;  %s870_s13 = smov 0  }
   0x8   :  { %s872_s14 = smov 0   ;;  %s874_s15 = smov 0  }
   0x9   :  { %s876_s16 = smov 0   ;;  %s878_s17 = smov 0  }
   0xa LB: > { %s569_s18 = sadd.s32 4294967295, %s845_s17   ;;  %s570_s19 = sadd.s32 4294967294, %s845_s17   ;;  %s845_s17 = sphi %s878_s17, %s26_s17   ;;  %s841_s16 = sphi %s876_s16, %s1066_s16   ;;  %s837_s15 = sphi %s874_s15, %s1065_s15   ;;  %s833_s14 = sphi %s872_s14, %s1064_s14   ;;  %s829_s13 = sphi %s870_s13, %s1063_s13   ;;  %s825_s12 = sphi %s868_s12, %s1062_s12  }
   0xb   : > { %s38_s20 = sadd.s32 1, %s841_s16  ;;  %s47_s21 = sadd.s32 1, %s833_s14 }
   0xc   : > { %p40_p0 = scmp.ge.s32.totalorder %s38_s20, 2  ;;  %p54_p1 = scmp.ne.s32.totalorder %s833_s14, %s829_s13 }
   0xd   : > { %p55_p2 = scmp.eq.s32.totalorder %s845_s17, 0  ;;  %p60_p3 = scmp.ne.s32.totalorder %s829_s13, %s825_s12 }
   0xe   : > { %s1068_s20 = smov (%p40_p0, %s38_s20), 0  ;;  %p61_p5 = scmp.eq.s32.totalorder %s569_s18, 0 }
   0xf   : > { %p909_p4 = por %p55_p2, %p54_p1  ;;  %s42_s23 = ssub.s32 %s841_s16, %s1068_s20 }
  0x10   : > { %p112_p6 = scmp.eq.s32.totalorder %s569_s18, 1  ;;  %p45_p7 = scmp.eq.s32.totalorder %s42_s23, 0 }
  0x11   : > { %p915_p8 = por %p61_p5, %p60_p3  ;;  %p118_p10 = scmp.eq.s32.totalorder %s570_s19, 1 }
  0x12   : > { %p919_p9 = por %p112_p6, %p54_p1  ;;  %p572_p12 = scmp.ge.s32.totalorder %s845_s17, 2 }
  0x13   : > { %s924_s26 = scalar_select %p45_p7, %s833_s14, %s47_s21  }
  0x14   : > { %p926_p11 = por %p118_p10, %p60_p3  ;;  %p606_p13 = scmp.lt.s32.totalorder %s845_s17, 2 }
  0x15   : > { %s164_s28 = sand.u32 1, %s833_s14   ;;  %s583_s30 = sshll.u32 %s841_s16, 3 }
  0x16   : > { %s573_s29 = sshll.u32 %s164_s28, 3  ;;  %s175_s6 = scalar_lea.hbm %s1051_s0, %s583_s30 }
  0x17   : > { %s168_s7 = scalar_lea.vmem [#allocation4], %s573_s29  ;;  %s177_s9 = sshll.u32 %s175_s6, 4  ;;  %s178_s9 = int_to_ptr.hbm [resolvable:$true] %s177_s9 }
  0x18   : > { %s179_s8 = sshll.u32 %s168_s7, 4  ;;  %p939_p0 = pnand %p606_p13, %p909_p4  ;;  %s180_s8 = int_to_ptr.vmem [resolvable:$true] %s179_s8 }
  0x19   : > { %p578_p1 = scmp.ge.s32.totalorder %s845_s17, 1  ;;  %p205_p2 = scmp.lt.s32.totalorder %s845_s17, 3 }
  0x1a   : > { %s165_s11 = scalar_lea.sflag [#allocation5], %s164_s28  ;;  %s576_s18 = sshll.u32 %s164_s28, 1 }
  0x1b   : > { %595 = dma.hbm_to_vmem [thread:$0]  (!%p939_p0), %s178_s9, 128, %s180_s8, %s165_s11  }
  0x1c   : > { %p206_p3 = pnand %p578_p1, %p205_p2  ;;  %s577_s19 = sshll.u32 %s841_s16, 1 }
  0x1d   : > { %s196_s29 = scalar_lea.hbm %s1052_s1, %s577_s19  ;;  %s190_s30 = scalar_lea.vmem [#allocation7], %s576_s18 }
  0x1e   : > { %s200_s22 = sshll.u32 %s190_s30, 4  ;;  %s198_s4 = sshll.u32 %s196_s29, 4  ;;  %s201_s22 = int_to_ptr.vmem [resolvable:$true] %s200_s22  ;;  %s199_s4 = int_to_ptr.hbm [resolvable:$true] %s198_s4 }
  0x1f   : > { %s187_s5 = scalar_lea.sflag [#allocation8], %s164_s28  ;;  %209 = sbr.rel (%p206_p3) target bundleno = 281 (0x119), region = 28 }
  0x20   : > { %598 = dma.hbm_to_vmem [thread:$0]  (!%p939_p0), %s199_s4, 32, %s201_s22, %s187_s5  }
  0x21   : > { %s954_s6 = sand.u32 (!%p206_p3), 1, %s829_s13  }
  0x22   : > { %s579_s7 = sshll.u32 (!%p206_p3), %s954_s6, 3  ;;  %s212_s8 = scalar_lea.sflag (!%p206_p3), [#allocation5], %s954_s6 }
  0x23   : > { %s215_s9 = scalar_lea.vmem (!%p206_p3), [#allocation4], %s579_s7 }
  0x24   : > { %808 = dma.done.wait (%p915_p8), %s212_s8, 128  }
  0x25   : > { %810 = vsyncadd (%p915_p8), %s212_s8, 4294967168  ;;  %s580_s28 = sshll.u32 %s954_s6, 1  ;;  %s222_s10 = scalar_lea.sflag [#allocation8], %s954_s6 }
  0x26   : > { %s964_s11 = scalar_lea.vmem [#allocation7], %s580_s28 }
  0x27   : > { %812 = dma.done.wait (%p915_p8), %s222_s10, 32  }
  0x28   : > { %814 = vsyncadd (%p915_p8), %s222_s10, 4294967264  ;;  %v263_v0 = vlaneseq  ;;  %v847_v2 = vmov 0.0   ;;  %v269_v3 = vld [vmem:[%s215_s9] sm:$0xff]  ;;  %vm285_vm1 = vcmask 1043456   ;;  %v270_v26 = vld [vmem:[%s964_s11] sm:$0x3]  ;;  %s422_s19 = scalar_lea.hbm %s1053_s2, %s837_s15  ;;  %s435_s4 = scalar_lea.hbm %s1054_s3, %s837_s15 }
  0x29   : > { %278 = vst [vmem:[#allocation1] ss:$2 sm:$0xff] %v269_v3  ;;  %v273_v27 = vperm.slane %v270_v26, 0  ;;  %v274_v29 = vperm.slane %v270_v26, 1  ;;  %vm365_vm4 = vcmask 1040384   ;;  %s250_s21 = scalar_lea.vmem [#allocation9], %s954_s6 }
  0x2a   : > { %vm970_vm0 = vcmp.lt.s32.totalorder %v263_v0, 256  ;;  %v272_v28 = vshrl.u32 %v263_v0, 7  ;;  %s424_s23 = sshll.u32 %s250_s21, 4  ;;  %s426_s29 = sshll.u32 %s422_s19, 4  ;;  %s425_s23 = int_to_ptr.vmem [resolvable:$true] %s424_s23  ;;  %s427_s29 = int_to_ptr.hbm [resolvable:$true] %s426_s29 }
  0x2b   : > { %267 = vst.msk [vmem:[#allocation2] sm:$0x3] %vm970_vm0, %v847_v2  ;;  %s410_s5 = scalar_lea.sflag [#allocation6], %s954_s6  ;;  %s741_s7 = sshra.s32 %s427_s29, 4  ;;  %s742_s7 = int_to_ptr.hbm [resolvable:$true] %s741_s7 }
  0x2c   : > { %268 = vst.msk [vmem:[#allocation3] sm:$0x3] %vm970_vm0, %v847_v2  ;;  %vm275_vm2 = vcmp.eq.s32.totalorder %v272_v28, %v273_v27  ;;  %vm276_vm3 = vcmp.eq.s32.totalorder %v272_v28, %v274_v29  ;;  %s743_s8 = scalar_lea.hbm %s742_s7, 1  ;;  %s747_s10 = scalar_lea.hbm %s1053_s2, 2 }
  0x2d   : > { %p744_p4 = scmp.ne.s32.totalorder %s742_s7, %s743_s8  ;;  %p748_p7 = scmp.lt.s32.totalorder %s742_s7, %s1053_s2 }
  0x2e   : > { %p749_p8 = scmp.lt.s32.totalorder %s747_s10, %s743_s8 }
  0x2f   : > { %p745_p5 = pnand %p744_p4, %p919_p9 }
  0x30   : > { %v279_v4 = vld.sshfl [vmem:[#allocation1] sm:$0xff pattern:$0x75316420]  ;;  %v280_v5 = vld.sshfl [vmem:[#allocation1 + $0x8] sm:$0xff pattern:$0x75316420]  ;;  %p750_p10 = por %p749_p8, %p748_p7 }
  0x31   : > { %300 = vst [vmem:[#allocation1] ss:$2 sm:$0xff] %v269_v3  ;;  %v283_v31 = vsel %vm275_vm2, %v279_v4, 0.0  ;;  %v284_v32 = vsel %vm276_vm3, %v280_v5, 0.0  ;;  %p746_p6 = pneg %p745_p5 }
  0x32   : > { %v286_v33 = vsel %vm285_vm1, %v283_v31, 0.0  ;;  %v293_v34 = vsel %vm285_vm1, %v284_v32, 0.0 }
  0x33   : > { %v287_v37 = vrot.slane %v286_v33, 4  ;;  %v294_v40 = vrot.slane %v293_v34, 4  ;;  %p751_p13 = pnand %p750_p10, %p746_p6 }
  0x35   : > { %v288_v45 = vadd.f32 %v287_v37, %v286_v33  ;;  %v295_v46 = vadd.f32 %v294_v40, %v293_v34 }
  0x37   : > { %v289_v51 = vrot.slane %v288_v45, 2  ;;  %v296_v52 = vrot.slane %v295_v46, 2 }
  0x38   : > { %v301_v6 = vld.sshfl [vmem:[#allocation1] sm:$0xff pattern:$0x75316420]  ;;  %v302_v7 = vld.sshfl [vmem:[#allocation1 + $0x8] sm:$0xff pattern:$0x75316420] }
  0x39   : > { %v305_v8 = vsel %vm285_vm1, %v301_v6, -inf  ;;  %v312_v9 = vsel %vm285_vm1, %v302_v7, -inf  ;;  %v290_v57 = vadd.f32 %v289_v51, %v288_v45  ;;  %v297_v58 = vadd.f32 %v296_v52, %v295_v46 }
  0x3a   : > { %v306_v10 = vrot.slane %v305_v8, 4  ;;  %v313_v11 = vrot.slane %v312_v9, 4 }
  0x3b   : > { %v291_v59 = vrot.slane %v290_v57, 1  ;;  %v298_v60 = vrot.slane %v297_v58, 1 }
  0x3c   : > { %v307_v12 = vmax.f32 %v305_v8, %v306_v10  ;;  %v314_v13 = vmax.f32 %v312_v9, %v313_v11  ;;  %v374_v10 = vld [vmem:[#allocation3] sm:$0x3] }
  0x3d   : > { %v292_v63 = vadd.f32 %v291_v59, %v290_v57  ;;  %v299_v2 = vadd.f32 %v298_v60, %v297_v58 }
  0x3e   : > { %v308_v14 = vrot.slane %v307_v12, 2  ;;  %v315_v15 = vrot.slane %v314_v13, 2 }
  0x40   : > { %v309_v16 = vmax.f32 %v307_v12, %v308_v14  ;;  %v316_v17 = vmax.f32 %v314_v13, %v315_v15 }
  0x42   : > { %v310_v18 = vrot.slane %v309_v16, 1  ;;  %v317_v19 = vrot.slane %v316_v17, 1 }
  0x44   : > { %v311_v20 = vmax.f32 %v309_v16, %v310_v18  ;;  %v318_v21 = vmax.f32 %v316_v17, %v317_v19  ;;  %v361_v18 = vld [vmem:[#allocation2] sm:$0x3] }
  0x46   : > { %v321_v22 = vrot.slane %v318_v21, 4 }
  0x48   : > { %v322_v23 = vsel %vm285_vm1, %v311_v20, %v321_v22 }
  0x49   : > { %v324_v24 = vsub.f32 %v269_v3, %v322_v23 }
  0x4b   : > { %v325_v25 = vmul.f32 1.442695, %v324_v24 }
  0x4d   : > { %657 = vpow2.f32 %v325_v25 }
  0x53   : > { %v658_v30 = vpop.eup %657 }
  0x54   : > { %328 = vst [vmem:[#allocation1] ss:$2 sm:$0xff] %v658_v30 }
  0x5b   : > { %v329_v35 = vld.sshfl [vmem:[#allocation1] sm:$0xff pattern:$0x75316420]  ;;  %v330_v36 = vld.sshfl [vmem:[#allocation1 + $0x8] sm:$0xff pattern:$0x75316420] }
  0x5c   : > { %v333_v38 = vsel %vm285_vm1, %v329_v35, 0.0  ;;  %v340_v39 = vsel %vm285_vm1, %v330_v36, 0.0 }
  0x5d   : > { %v334_v41 = vrot.slane %v333_v38, 4  ;;  %v341_v42 = vrot.slane %v340_v39, 4 }
  0x5f   : > { %v335_v43 = vadd.f32 %v334_v41, %v333_v38  ;;  %v342_v44 = vadd.f32 %v341_v42, %v340_v39 }
  0x61   : > { %v336_v47 = vrot.slane %v335_v43, 2  ;;  %v343_v48 = vrot.slane %v342_v44, 2 }
  0x63   : > { %v337_v49 = vadd.f32 %v336_v47, %v335_v43  ;;  %v344_v50 = vadd.f32 %v343_v48, %v342_v44 }
  0x65   : > { %v338_v53 = vrot.slane %v337_v49, 1  ;;  %v345_v54 = vrot.slane %v344_v50, 1 }
  0x67   : > { %v339_v55 = vadd.f32 %v338_v53, %v337_v49  ;;  %v346_v56 = vadd.f32 %v345_v54, %v344_v50 }
  0x69   : > { %659 = vlog2.f32 %v339_v55 }
  0x6a   : > { %661 = vlog2.f32 %v346_v56 }
  0x6f   : > { %v660_v61 = vpop.eup %659 }
  0x70   : > { %v662_v62 = vpop.eup %661  ;;  %v348_v0 = vmul.f32 0.6931472, %v660_v61 }
  0x71   : > { %v350_v3 = vmul.f32 0.6931472, %v662_v62 }
  0x72   : > { %v351_v4 = vadd.f32 %v348_v0, %v311_v20 }
  0x73   : > { %v352_v5 = vadd.f32 %v350_v3, %v318_v21 }
  0x74   : > { %v353_v6 = vsub.f32 %v351_v4, %v292_v63 }
  0x75   : > { %v354_v7 = vsub.f32 %v352_v5, %v299_v2 }
  0x76   : > { %v355_v8 = vsub.f32 0.0, %v353_v6 }
  0x77   : > { %v356_v9 = vsub.f32 0.0, %v354_v7  ;;  %v377_v11 = vrot.slane %v354_v7, 7 }
  0x78   : > { %v357_v12 = vmul.f32 1.442695, %v355_v8 }
  0x79   : > { %v359_v13 = vmul.f32 1.442695, %v356_v9  ;;  %v378_v14 = vsel %vm365_vm4, %v353_v6, %v377_v11 }
  0x7a   : > { %663 = vpow2.f32 %v357_v12  ;;  %v380_v15 = vadd.f32 %v378_v14, %v374_v10 }
  0x7b   : > { %665 = vpow2.f32 %v359_v13 }
  0x7c   : > { %381 = vst.msk [vmem:[#allocation3] sm:$0x3] %vm970_vm0, %v380_v15 }
  0x80   : > { %v664_v16 = vpop.eup %663 }
  0x81   : > { %v666_v17 = vpop.eup %665 }
  0x82   : > { %v364_v19 = vrot.slane %v666_v17, 7 }
  0x83   : > { %v396_v23 = vld [vmem:[#allocation3] sm:$0x3] }
  0x84   : > { %v366_v20 = vsel %vm365_vm4, %v664_v16, %v364_v19  ;;  %v398_v28 = vperm.slane %v396_v23, 0  ;;  %v399_v29 = vperm.slane %v396_v23, 1 }
  0x85   : > { %v368_v21 = vadd.f32 %v366_v20, %v361_v18 }
  0x86   : > { %v402_v31 = vsel %vm365_vm4, %v398_v28, 0.0  ;;  %v403_v1 = vsel %vm365_vm4, %v399_v29, 0.0 }
  0x87   : > { %373 = vst.msk [vmem:[#allocation2] sm:$0x3] %vm970_vm0, %v368_v21  ;;  %v404_v32 = vadd.f32 %v403_v1, %v402_v31 }
  0x8e   : > { %v385_v22 = vld [vmem:[#allocation2] sm:$0x3] }
  0x8f   : > { %v387_v24 = vperm.slane %v385_v22, 0  ;;  %v388_v25 = vperm.slane %v385_v22, 1 }
  0x91   : > { %v391_v26 = vsel %vm365_vm4, %v387_v24, 0.0  ;;  %v392_v27 = vsel %vm365_vm4, %v388_v25, 0.0 }
  0x92   : > { %v393_v30 = vadd.f32 %v392_v27, %v391_v26 }
  0x94   : > { %394 = vadd.xlane.f32.xlu0 %v393_v30 }
  0x9c   : > { %405 = vadd.xlane.f32.xlu0 %v404_v32 }
 0x107   : > { %v395_v33 = vpop.xlane.xlu0 %394 }
 0x108   : > { %407 = vst [vmem:[%s250_s21] sm:$0x1] %v395_v33 }
 0x109   : > { %754 = shalt.err (!%p751_p13)
}
 0x10a   : > { %588 = dma.vmem_to_hbm [thread:$0]  (%p919_p9), %s425_s23, 16, %s427_s29, %s410_s5  }
 0x10b   : > { %s256_s15 = scalar_lea.vmem [#allocation10], %s954_s6  ;;  %s439_s19 = sshll.u32 %s435_s4, 4  ;;  %s440_s19 = int_to_ptr.hbm [resolvable:$true] %s439_s19 }
 0x10c   : > { %s437_s18 = sshll.u32 %s256_s15, 4  ;;  %s414_s21 = scalar_lea.sflag [#allocation11], %s954_s6  ;;  %s438_s18 = int_to_ptr.vmem [resolvable:$true] %s437_s18 }
 0x10d   : > { %s769_s30 = sshra.s32 %s440_s19, 4  ;;  %s775_s9 = scalar_lea.hbm %s1054_s3, 2  ;;  %s770_s30 = int_to_ptr.hbm [resolvable:$true] %s769_s30 }
 0x10e   : > { %s771_s22 = scalar_lea.hbm %s770_s30, 1  ;;  %p776_p3 = scmp.lt.s32.totalorder %s770_s30, %s1054_s3 }
 0x10f   : > { %v406_v34 = vpop.xlane.xlu0 %405  ;;  %p772_p0 = scmp.ne.s32.totalorder %s770_s30, %s771_s22  ;;  %p777_p4 = scmp.lt.s32.totalorder %s775_s9, %s771_s22 }
 0x110   : > { %408 = vst [vmem:[%s256_s15] sm:$0x1] %v406_v34 }
 0x111   : > { %p773_p1 = pnand %p772_p0, %p919_p9  ;;  %p778_p5 = por %p777_p4, %p776_p3 }
 0x113   : > { %p774_p2 = pneg %p773_p1 }
 0x115   : > { %p779_p6 = pnand %p778_p5, %p774_p2 }
 0x117   : > { %782 = shalt.err (!%p779_p6)
}
 0x118   : > { %589 = dma.vmem_to_hbm [thread:$0]  (%p919_p9), %s438_s18, 16, %s440_s19, %s414_s21  }
 0x119 PF: > { %s451_s6 = sand.u32 1, %s825_s12   ;;  %p600_p7 = pnand %p572_p12, %p926_p11 }
 0x11a   : > { %s452_s4 = scalar_lea.sflag [#allocation6], %s451_s6 }
 0x11b   : > { %p601_p8 = pneg %p600_p7 }
 0x11d   : > { %816 = dma.done.wait (%p601_p8), %s452_s4, 16  }
 0x11e   : > { %818 = vsyncadd (%p601_p8), %s452_s4, 4294967280  ;;  %s461_s5 = scalar_lea.sflag [#allocation11], %s451_s6 }
 0x11f   : > { %820 = dma.done.wait (%p601_p8), %s461_s5, 16  }
 0x120   : > { %822 = vsyncadd (%p601_p8), %s461_s5, 4294967280  ;;  %s26_s17 = sadd.s32 1, %s845_s17   ;;  %s1062_s12 = smov %s829_s13 }
 0x121   : > { %p23_p10 = scmp.ge.s32.totalorder %s26_s17, 4   ;;  %s1063_s13 = smov %s833_s14 }
 0x122   : > { %s1064_s14 = smov %s924_s26  ;;  %s1065_s15 = smov %s841_s16 }
 0x123   : > { %s1066_s16 = smov %s1068_s20  ;;  %25 = sbr.rel (!%p23_p10) target bundleno = 10 (0xa), region = 111 }
 0x128   :  { %466 = vsyncpa [#allocation5], 1 }
 0x129   :  { %468 = vsyncpa [#allocation5 + $0x1], 1 }
 0x12a   :  { %469 = vsyncpa [#allocation8], 1 }
 0x12b   :  { %471 = vsyncpa [#allocation8 + $0x1], 1 }
 0x12c   :  { %472 = vsyncpa [#allocation6], 1 }
 0x12d   :  { %474 = vsyncpa [#allocation6 + $0x1], 1 }
 0x12e   :  { %475 = vsyncpa [#allocation11], 1 }
 0x12f   :  { %477 = vsyncpa [#allocation11 + $0x1], 1 }

</bundles_post_ra>
